<compile_context>
chip_gen: v6e
topology: v6e:2x2x1
jax: 0.10.0
libtpu: 0.0.40
codegen_flags: <defaults>
</compile_context>

<pallas_src>
import functools

import numpy as np
import jax
import jax.numpy as jnp
from jax.experimental import pallas as pl
from jax.experimental.pallas import tpu as pltpu


def _ca_kernel(x_ref, upd_ref, w_eff_ref, b1_ref, w2_ref, b2_ref, out_ref, *,
               r, H, W, bt, neg_slope, alpha_idx):
    k = 2 * r + 1
    HW = H * W
    inv_kk = 1.0 / float(k * k)

    # Lane-within-row index and circular-W wrap-fix masks, hoisted once per
    # grid step (shared across all images in the block and both shift_w users).
    jw = jax.lax.broadcasted_iota(jnp.int32, (1, HW), 1) % W
    pos_mask = {d: jw < (W - d) for d in range(1, r + 1)}
    neg_mask = {d: jw >= d for d in range(1, r + 1)}

    def roll_flat(a, s):
        s = s % HW                      # pltpu.roll wants a non-negative shift
        if s == 0:
            return a
        return pltpu.roll(a, s, axis=1)  # single XLU rotate, no slice+concat

    def shift_w(a, dv):
        # value at (i, j) becomes a[i, (j + dv) mod W]   (flat (rows, H*W))
        if dv == 0:
            return a
        if dv > 0:
            return jnp.where(pos_mask[dv], roll_flat(a, -dv), roll_flat(a, W - dv))
        d = -dv
        return jnp.where(neg_mask[d], roll_flat(a, d), roll_flat(a, d - W))

    def shift_h(a, du):
        # value at (i, j) becomes a[(i + du) mod H, j]  == flat roll by -du*W
        return roll_flat(a, -du * W)

    w_eff = w_eff_ref[...]      # (hidden, k*k*C)  perceive folded into conv1
    b1 = b1_ref[...]            # (hidden, 1)
    w2 = w2_ref[...]            # (C, hidden)      step_size pre-folded
    b2 = b2_ref[...]            # (C, 1)           step_size pre-folded

    for b in range(bt):         # static unroll over the images of this block
        x = x_ref[b]            # (C, HW)  lane-dense flattened spatial
        upd = upd_ref[b]        # (1, HW)  stochastic update mask (0/1)

        # Circular W-shifted copies (reused by im2col and the pre-life pool).
        xw = {dv: shift_w(x, dv) for dv in range(-r, r + 1)}

        # im2col: stack the k*k circularly shifted copies along sublanes
        # (row order = tap*C + channel) and do ONE MXU matmul with the
        # perceive-folded conv1 weight.
        xw_cat = jnp.concatenate([xw[dv] for dv in range(-r, r + 1)], axis=0)
        stack = jnp.concatenate([shift_h(xw_cat, du) for du in range(-r, r + 1)],
                                axis=0)                        # (k*k*C, HW)

        h = jnp.dot(w_eff, stack, preferred_element_type=jnp.float32) + b1
        h = jnp.where(h > 0, h, neg_slope * h)                 # LeakyReLU(0.01)

        dx = jnp.dot(w2, h, preferred_element_type=jnp.float32) + b2
        x_new = x + dx * upd                                   # step_size folded

        # Living masks: separable circular (k x k) max / avg pool on alpha.
        # W pass: the pre-pool reuses xw (free slices), the post-pool shifts
        # the updated alpha channel with the shared wrap masks.
        pre_mx_w = xw[0][alpha_idx:alpha_idx + 1]
        pre_sm_w = pre_mx_w
        for dv in range(1, r + 1):
            a_p = xw[dv][alpha_idx:alpha_idx + 1]
            a_n = xw[-dv][alpha_idx:alpha_idx + 1]
            pre_mx_w = jnp.maximum(jnp.maximum(pre_mx_w, a_p), a_n)
            pre_sm_w = pre_sm_w + a_p + a_n

        alpha_new = x_new[alpha_idx:alpha_idx + 1]             # (1, HW)
        post_mx_w = alpha_new
        post_sm_w = alpha_new
        for dv in range(1, r + 1):
            a_p = shift_w(alpha_new, dv)
            a_n = shift_w(alpha_new, -dv)
            post_mx_w = jnp.maximum(jnp.maximum(post_mx_w, a_p), a_n)
            post_sm_w = post_sm_w + a_p + a_n

        # H pass: one stacked (4, HW) array so each roll covers all four rows.
        pool = jnp.concatenate([pre_mx_w, post_mx_w, pre_sm_w, post_sm_w], axis=0)
        mx = pool[0:2]
        sm = pool[2:4]
        for du in range(1, r + 1):
            up = shift_h(pool, du)
            dn = shift_h(pool, -du)
            mx = jnp.maximum(jnp.maximum(mx, up[0:2]), dn[0:2])
            sm = sm + up[2:4] + dn[2:4]

        alive = jnp.logical_and(mx > 0.1, sm * inv_kk < 0.2)   # (2, HW) pre|post
        life = jnp.logical_and(alive[0:1], alive[1:2]).astype(jnp.float32)

        out_ref[b] = x_new * life                              # lane-dense store


def _images_per_block(B):
    """Images per grid step: amortize per-step overhead / tiny DMAs, but keep
    the grid length >= 2 ('parallel') when possible so both v7x TCs get work."""
    if B < 2:
        return 1
    for cand in range(min(8, B // 2), 0, -1):
        if B % cand == 0:
            return cand
    return 1


def ca_forward(x, update_mask, filters, w1, b1, w2, b2, *, r, step_size=1.0,
               alpha_idx=3):
    """x: (B, C, H, W) f32; update_mask: (B, 1, H, W) f32 in {0,1};
    filters: (numF, k, k) (identity first); w1: (hidden, C*numF), columns in
    torch perceive order c*numF+m; b1: (hidden, 1); w2: (C, hidden); b2: (C, 1)."""
    B, C, H, W = x.shape
    numF, k, _ = filters.shape
    hidden_n = w1.shape[0]
    HW = H * W
    assert C > alpha_idx, "living mask uses channel 3 (as in the torch module)"

    hp = jax.lax.Precision.HIGHEST
    # Fold the depthwise circular perceive conv into conv1, flattened tap-major:
    #   w_eff[o, (u*k + v)*C + c] = sum_m w1[o, c*numF + m] * filt[m, u, v]
    w1_r = jnp.asarray(w1, jnp.float32).reshape(hidden_n, C, numF)
    w_eff = jnp.einsum('hcm,muv->huvc', w1_r, jnp.asarray(filters, jnp.float32),
                       precision=hp).reshape(hidden_n, k * k * C)
    # Fold step_size into conv2 (one-time host-side op).
    w2_s = jnp.asarray(w2, jnp.float32) * float(step_size)
    b2_s = jnp.asarray(b2, jnp.float32) * float(step_size)
    b1 = jnp.asarray(b1, jnp.float32)

    bt = _images_per_block(B)
    n_blocks = B // bt

    x_flat = x.reshape(B, C, HW).astype(jnp.float32)
    upd_flat = update_mask.reshape(B, 1, HW).astype(jnp.float32)

    kernel = functools.partial(_ca_kernel, r=r, H=H, W=W, bt=bt,
                               neg_slope=0.01, alpha_idx=alpha_idx)

    out_flat = pl.pallas_call(
        kernel,
        out_shape=jax.ShapeDtypeStruct((B, C, HW), jnp.float32),
        grid_spec=pltpu.PrefetchScalarGridSpec(
            num_scalar_prefetch=0,
            grid=(n_blocks,),
            in_specs=[
                pl.BlockSpec((bt, C, HW), lambda i: (i, 0, 0)),           # x (flat)
                pl.BlockSpec((bt, 1, HW), lambda i: (i, 0, 0)),           # update mask
                pl.BlockSpec((hidden_n, k * k * C), lambda i: (0, 0)),    # folded conv1
                pl.BlockSpec((hidden_n, 1), lambda i: (0, 0)),            # conv1 bias
                pl.BlockSpec((C, hidden_n), lambda i: (0, 0)),            # conv2 * step
                pl.BlockSpec((C, 1), lambda i: (0, 0)),                   # conv2 b * step
            ],
            out_specs=pl.BlockSpec((bt, C, HW), lambda i: (i, 0, 0)),
        ),
        compiler_params=pltpu.CompilerParams(
            dimension_semantics=("parallel",)),
    )(x_flat, upd_flat, w_eff, b1, w2_s, b2_s)
    return out_flat.reshape(B, C, H, W)


def _ca_reference(x, update_mask, filters, w1, b1, w2, b2, *, r, step_size=1.0):
    """Straightforward pure-JAX reference (circular neighborhoods via jnp.roll)."""
    B, C, H, W = x.shape
    numF, k, _ = filters.shape

    def living(xx):
        alpha = xx[:, 3]
        vals = [jnp.roll(alpha, (r - u, r - v), axis=(1, 2))
                for u in range(k) for v in range(k)]
        mx = vals[0]
        sm = vals[0]
        for v_ in vals[1:]:
            mx = jnp.maximum(mx, v_)
            sm = sm + v_
        return jnp.logical_and(mx > 0.1, sm / (k * k) < 0.2)

    pre = living(x)
    ys = []
    for c in range(C):
        for m in range(numF):
            acc = jnp.zeros((B, H, W), jnp.float32)
            for u in range(k):
                for v in range(k):
                    acc = acc + filters[m, u, v] * jnp.roll(
                        x[:, c], (r - u, r - v), axis=(1, 2))
            ys.append(acc)
    y = jnp.stack(ys, axis=1)                                   # (B, C*numF, H, W)
    hp = jax.lax.Precision.HIGHEST
    h = jnp.einsum('oq,bqhw->bohw', w1, y, precision=hp) + b1.reshape(1, -1, 1, 1)
    h = jnp.where(h > 0, h, 0.01 * h)
    dx = jnp.einsum('oq,bqhw->bohw', w2, h, precision=hp) + b2.reshape(1, -1, 1, 1)
    xn = x + dx * step_size * update_mask
    post = living(xn)
    life = jnp.logical_and(pre, post).astype(jnp.float32)[:, None]
    return xn * life


def init_params(key, channel_n, r, num_filters, hidden_n):
    """Deterministic synthetic init mirroring CAModel.__init__ shapes/recipes."""
    k = 2 * r + 1
    numF = num_filters + 1
    keys = jax.random.split(key, num_filters + 4)

    filt_list = []
    ident = np.zeros((k, k), np.float32)
    ident[r, r] = 1.0
    filt_list.append(ident)
    for i in range(num_filters):
        f = np.asarray(jax.random.normal(keys[i], (k,), jnp.float32))
        f = (f + f[::-1]) / 2.0
        F = np.outer(f, f)
        F = F - F.mean()
        F[r, r] = 0.0
        F = F / (F.size - 1)
        filt_list.append(F.astype(np.float32))
    filters = jnp.asarray(np.stack(filt_list, axis=0))

    gain = float(np.sqrt(2.0 / (1.0 + 0.01 ** 2)))      # calculate_gain('leaky_relu')
    in1 = channel_n * numF
    bound1 = gain * float(np.sqrt(6.0 / (in1 + hidden_n)))
    w1 = jax.random.uniform(keys[num_filters], (hidden_n, in1), jnp.float32,
                            -bound1, bound1)
    b1 = jax.random.uniform(keys[num_filters + 1], (hidden_n, 1), jnp.float32,
                            -1.0 / np.sqrt(in1), 1.0 / np.sqrt(in1))
    bound2 = gain * float(np.sqrt(6.0 / (hidden_n + channel_n)))
    w2 = jax.random.uniform(keys[num_filters + 2], (channel_n, hidden_n),
                            jnp.float32, -bound2, bound2)
    b2 = jax.random.uniform(keys[num_filters + 3], (channel_n, 1), jnp.float32,
                            -1.0 / np.sqrt(hidden_n), 1.0 / np.sqrt(hidden_n))
    return filters, w1, b1, w2, b2


if __name__ == "__main__":
    channel_n, r, num_filters, hidden_n = 4, 1, 2, 32
    H, W = 16, 16
    fire_rate, step_size = 0.5, 1.0

    key = jax.random.PRNGKey(0)
    kx, km, kp = jax.random.split(key, 3)
    filters, w1, b1, w2, b2 = init_params(kp, channel_n, r, num_filters, hidden_n)

    # Check both the bt==1 path (B=2 -> grid=(2,)) and the multi-image-per-block
    # path (B=4 -> bt=2, grid=(2,)).
    for B in (2, 4):
        kxb, kmb = jax.random.split(jax.random.fold_in(kx, B), 2)
        x = jax.random.uniform(kxb, (B, channel_n, H, W), jnp.float32)
        # TODO(synk): torch.rand update mask is generated here (deterministic key)
        # instead of in-kernel (could use pltpu.prng_* inside the kernel if desired).
        update_mask = (jax.random.uniform(kmb, (B, 1, H, W), jnp.float32)
                       <= fire_rate).astype(jnp.float32)

        out = ca_forward(x, update_mask, filters, w1, b1, w2, b2,
                         r=r, step_size=step_size)
        out = jax.block_until_ready(out)
        assert out.shape == (B, channel_n, H, W) and out.dtype == jnp.float32

        ref = _ca_reference(x, update_mask, filters, w1, b1, w2, b2,
                            r=r, step_size=step_size)
        np.testing.assert_allclose(np.asarray(out), np.asarray(ref),
                                   rtol=2e-3, atol=2e-3)
    print("KERNEL_OK")
</pallas_src>

<mosaic_0001>
module attributes {stable_mosaic.version = 11 : i64} {
  func.func @_ca_kernel(%arg0: i32, %arg1: memref<1x4x256xf32, #tpu.memory_space<vmem>>, %arg2: memref<1x1x256xf32, #tpu.memory_space<vmem>>, %arg3: memref<32x36xf32, #tpu.memory_space<vmem>>, %arg4: memref<32x1xf32, #tpu.memory_space<vmem>>, %arg5: memref<4x32xf32, #tpu.memory_space<vmem>>, %arg6: memref<4x1xf32, #tpu.memory_space<vmem>>, %arg7: memref<1x4x256xf32, #tpu.memory_space<vmem>>) attributes {dimension_semantics = [#tpu.dimension_semantics<parallel>], iteration_bounds = array<i64: 2>, scalar_prefetch = 0 : i64, scratch_operands = 0 : i64, tpu.core_type = #tpu.core_type<tc>, window_params = [{transform_indices = @transform_0, window_bounds = array<i64: 1, 4, 256>}, {transform_indices = @transform_1, window_bounds = array<i64: 1, 1, 256>}, {pipeline_mode = #tpu.pipeline_mode<synchronous>, transform_indices = @transform_2, window_bounds = array<i64: 32, 36>}, {pipeline_mode = #tpu.pipeline_mode<synchronous>, transform_indices = @transform_3, window_bounds = array<i64: 32, 1>}, {pipeline_mode = #tpu.pipeline_mode<synchronous>, transform_indices = @transform_4, window_bounds = array<i64: 4, 32>}, {pipeline_mode = #tpu.pipeline_mode<synchronous>, transform_indices = @transform_5, window_bounds = array<i64: 4, 1>}, {transform_indices = @transform_6, window_bounds = array<i64: 1, 4, 256>}]} {
    %0 = tpu.iota {dimensions = array<i32: 1>} : vector<1x256xi32>
    %c16_i32 = arith.constant 16 : i32
    %c0_i32 = arith.constant 0 : i32
    %1 = arith.cmpi eq, %c16_i32, %c0_i32 : i32
    %c1_i32 = arith.constant 1 : i32
    %2 = arith.select %1, %c1_i32, %c16_i32 : i32
    %3 = vector.broadcast %2 : i32 to vector<1x256xi32>
    %4 = arith.remsi %0, %3 : vector<1x256xi32>
    %c0_i32_0 = arith.constant 0 : i32
    %5 = vector.broadcast %c0_i32_0 : i32 to vector<1x256xi32>
    %6 = arith.cmpi ne, %4, %5 : vector<1x256xi32>
    %c0_i32_1 = arith.constant 0 : i32
    %7 = vector.broadcast %c0_i32_1 : i32 to vector<1x256xi32>
    %8 = arith.cmpi slt, %4, %7 : vector<1x256xi32>
    %c0_i32_2 = arith.constant 0 : i32
    %9 = arith.cmpi slt, %2, %c0_i32_2 : i32
    %10 = vector.broadcast %9 : i1 to vector<1x256xi1>
    %11 = vector.broadcast %10 : vector<1x256xi1> to vector<1x256xi1>
    %12 = arith.xori %8, %11 : vector<1x256xi1>
    %13 = arith.andi %12, %6 : vector<1x256xi1>
    %14 = vector.broadcast %2 : i32 to vector<1x256xi32>
    %15 = arith.addi %4, %14 : vector<1x256xi32>
    %16 = arith.select %13, %15, %4 : vector<1x256xi1>, vector<1x256xi32>
    %c15_i32 = arith.constant 15 : i32
    %17 = vector.broadcast %c15_i32 : i32 to vector<1x256xi32>
    %18 = arith.cmpi slt, %16, %17 : vector<1x256xi32>
    %c1_i32_3 = arith.constant 1 : i32
    %19 = vector.broadcast %c1_i32_3 : i32 to vector<1x256xi32>
    %20 = arith.cmpi sge, %16, %19 : vector<1x256xi32>
    %c0 = arith.constant 0 : index
    %c0_4 = arith.constant 0 : index
    %21 = vector.load %arg3[%c0, %c0_4] : memref<32x36xf32, #tpu.memory_space<vmem>>, vector<32x36xf32>
    %c0_5 = arith.constant 0 : index
    %c0_6 = arith.constant 0 : index
    %22 = vector.load %arg4[%c0_5, %c0_6] : memref<32x1xf32, #tpu.memory_space<vmem>>, vector<32x1xf32>
    %c0_7 = arith.constant 0 : index
    %c0_8 = arith.constant 0 : index
    %23 = vector.load %arg5[%c0_7, %c0_8] : memref<4x32xf32, #tpu.memory_space<vmem>>, vector<4x32xf32>
    %c0_9 = arith.constant 0 : index
    %c0_10 = arith.constant 0 : index
    %24 = vector.load %arg6[%c0_9, %c0_10] : memref<4x1xf32, #tpu.memory_space<vmem>>, vector<4x1xf32>
    %c0_11 = arith.constant 0 : index
    %c0_12 = arith.constant 0 : index
    %c0_13 = arith.constant 0 : index
    %25 = vector.load %arg1[%c0_11, %c0_12, %c0_13] : memref<1x4x256xf32, #tpu.memory_space<vmem>>, vector<1x4x256xf32>
    %26 = vector.shape_cast %25 : vector<1x4x256xf32> to vector<4x256xf32>
    %c0_14 = arith.constant 0 : index
    %c0_15 = arith.constant 0 : index
    %c0_16 = arith.constant 0 : index
    %27 = vector.load %arg2[%c0_14, %c0_15, %c0_16] : memref<1x1x256xf32, #tpu.memory_space<vmem>>, vector<1x1x256xf32>
    %28 = vector.shape_cast %27 : vector<1x1x256xf32> to vector<1x256xf32>
    %c1_i32_17 = arith.constant 1 : i32
    %29 = tpu.dynamic_rotate %26 by %c1_i32_17 dim 1 : vector<4x256xf32>, i32 -> vector<4x256xf32>
    %c241_i32 = arith.constant 241 : i32
    %30 = tpu.dynamic_rotate %26 by %c241_i32 dim 1 : vector<4x256xf32>, i32 -> vector<4x256xf32>
    %31 = vector.shape_cast %20 : vector<1x256xi1> to vector<1x256xi1>
    %32 = vector.broadcast %31 : vector<1x256xi1> to vector<4x256xi1>
    %33 = arith.select %32, %29, %30 : vector<4x256xi1>, vector<4x256xf32>
    %c255_i32 = arith.constant 255 : i32
    %34 = tpu.dynamic_rotate %26 by %c255_i32 dim 1 : vector<4x256xf32>, i32 -> vector<4x256xf32>
    %c15_i32_18 = arith.constant 15 : i32
    %35 = tpu.dynamic_rotate %26 by %c15_i32_18 dim 1 : vector<4x256xf32>, i32 -> vector<4x256xf32>
    %36 = vector.shape_cast %18 : vector<1x256xi1> to vector<1x256xi1>
    %37 = vector.broadcast %36 : vector<1x256xi1> to vector<4x256xi1>
    %38 = arith.select %37, %34, %35 : vector<4x256xi1>, vector<4x256xf32>
    %39 = tpu.concatenate %33, %26, %38 in 0 : vector<4x256xf32>, vector<4x256xf32>, vector<4x256xf32> -> vector<12x256xf32>
    %c16_i32_19 = arith.constant 16 : i32
    %40 = tpu.dynamic_rotate %39 by %c16_i32_19 dim 1 : vector<12x256xf32>, i32 -> vector<12x256xf32>
    %c240_i32 = arith.constant 240 : i32
    %41 = tpu.dynamic_rotate %39 by %c240_i32 dim 1 : vector<12x256xf32>, i32 -> vector<12x256xf32>
    %42 = tpu.concatenate %40, %39, %41 in 0 : vector<12x256xf32>, vector<12x256xf32>, vector<12x256xf32> -> vector<36x256xf32>
    %cst = arith.constant dense<0.000000e+00> : vector<32x256xf32>
    %43 = tpu.matmul %21, %42, %cst {dimension_numbers = #tpu.dot_dimension_numbers<[1], [0], [0], [1], [0, 0, 1, 1], [], []>} : vector<32x36xf32>, vector<36x256xf32>, vector<32x256xf32> -> vector<32x256xf32>
    %44 = vector.broadcast %22 : vector<32x1xf32> to vector<32x256xf32>
    %45 = arith.addf %43, %44 : vector<32x256xf32>
    %cst_20 = arith.constant 0.000000e+00 : f32
    %46 = vector.broadcast %cst_20 : f32 to vector<32x256xf32>
    %47 = arith.cmpf ogt, %45, %46 : vector<32x256xf32>
    %cst_21 = arith.constant 0.00999999977 : f32
    %48 = vector.broadcast %cst_21 : f32 to vector<32x256xf32>
    %49 = arith.mulf %48, %45 : vector<32x256xf32>
    %50 = arith.select %47, %45, %49 : vector<32x256xi1>, vector<32x256xf32>
    %cst_22 = arith.constant dense<0.000000e+00> : vector<4x256xf32>
    %51 = tpu.matmul %23, %50, %cst_22 {dimension_numbers = #tpu.dot_dimension_numbers<[1], [0], [0], [1], [0, 0, 1, 1], [], []>} : vector<4x32xf32>, vector<32x256xf32>, vector<4x256xf32> -> vector<4x256xf32>
    %52 = vector.broadcast %24 : vector<4x1xf32> to vector<4x256xf32>
    %53 = arith.addf %51, %52 : vector<4x256xf32>
    %54 = vector.broadcast %28 : vector<1x256xf32> to vector<4x256xf32>
    %55 = arith.mulf %53, %54 : vector<4x256xf32>
    %56 = arith.addf %26, %55 : vector<4x256xf32>
    %57 = vector.extract_strided_slice %26 {offsets = [3, 0], sizes = [1, 256], strides = [1, 1]} : vector<4x256xf32> to vector<1x256xf32>
    %58 = vector.extract_strided_slice %38 {offsets = [3, 0], sizes = [1, 256], strides = [1, 1]} : vector<4x256xf32> to vector<1x256xf32>
    %59 = vector.extract_strided_slice %33 {offsets = [3, 0], sizes = [1, 256], strides = [1, 1]} : vector<4x256xf32> to vector<1x256xf32>
    %60 = arith.maximumf %57, %58 : vector<1x256xf32>
    %61 = arith.maximumf %60, %59 : vector<1x256xf32>
    %62 = arith.addf %57, %58 : vector<1x256xf32>
    %63 = arith.addf %62, %59 : vector<1x256xf32>
    %64 = vector.extract_strided_slice %56 {offsets = [3, 0], sizes = [1, 256], strides = [1, 1]} : vector<4x256xf32> to vector<1x256xf32>
    %c255_i32_23 = arith.constant 255 : i32
    %65 = tpu.dynamic_rotate %64 by %c255_i32_23 dim 1 : vector<1x256xf32>, i32 -> vector<1x256xf32>
    %c15_i32_24 = arith.constant 15 : i32
    %66 = tpu.dynamic_rotate %64 by %c15_i32_24 dim 1 : vector<1x256xf32>, i32 -> vector<1x256xf32>
    %67 = arith.select %18, %65, %66 : vector<1x256xi1>, vector<1x256xf32>
    %c1_i32_25 = arith.constant 1 : i32
    %68 = tpu.dynamic_rotate %64 by %c1_i32_25 dim 1 : vector<1x256xf32>, i32 -> vector<1x256xf32>
    %c241_i32_26 = arith.constant 241 : i32
    %69 = tpu.dynamic_rotate %64 by %c241_i32_26 dim 1 : vector<1x256xf32>, i32 -> vector<1x256xf32>
    %70 = arith.select %20, %68, %69 : vector<1x256xi1>, vector<1x256xf32>
    %71 = arith.maximumf %64, %67 : vector<1x256xf32>
    %72 = arith.maximumf %71, %70 : vector<1x256xf32>
    %73 = arith.addf %64, %67 : vector<1x256xf32>
    %74 = arith.addf %73, %70 : vector<1x256xf32>
    %75 = tpu.concatenate %61, %72, %63, %74 in 0 : vector<1x256xf32>, vector<1x256xf32>, vector<1x256xf32>, vector<1x256xf32> -> vector<4x256xf32>
    %76 = vector.extract_strided_slice %75 {offsets = [0, 0], sizes = [2, 256], strides = [1, 1]} : vector<4x256xf32> to vector<2x256xf32>
    %77 = vector.extract_strided_slice %75 {offsets = [2, 0], sizes = [2, 256], strides = [1, 1]} : vector<4x256xf32> to vector<2x256xf32>
    %c240_i32_27 = arith.constant 240 : i32
    %78 = tpu.dynamic_rotate %75 by %c240_i32_27 dim 1 : vector<4x256xf32>, i32 -> vector<4x256xf32>
    %c16_i32_28 = arith.constant 16 : i32
    %79 = tpu.dynamic_rotate %75 by %c16_i32_28 dim 1 : vector<4x256xf32>, i32 -> vector<4x256xf32>
    %80 = vector.extract_strided_slice %78 {offsets = [0, 0], sizes = [2, 256], strides = [1, 1]} : vector<4x256xf32> to vector<2x256xf32>
    %81 = arith.maximumf %76, %80 : vector<2x256xf32>
    %82 = vector.extract_strided_slice %79 {offsets = [0, 0], sizes = [2, 256], strides = [1, 1]} : vector<4x256xf32> to vector<2x256xf32>
    %83 = arith.maximumf %81, %82 : vector<2x256xf32>
    %84 = vector.extract_strided_slice %78 {offsets = [2, 0], sizes = [2, 256], strides = [1, 1]} : vector<4x256xf32> to vector<2x256xf32>
    %85 = arith.addf %77, %84 : vector<2x256xf32>
    %86 = vector.extract_strided_slice %79 {offsets = [2, 0], sizes = [2, 256], strides = [1, 1]} : vector<4x256xf32> to vector<2x256xf32>
    %87 = arith.addf %85, %86 : vector<2x256xf32>
    %cst_29 = arith.constant 1.000000e-01 : f32
    %88 = vector.broadcast %cst_29 : f32 to vector<2x256xf32>
    %89 = arith.cmpf ogt, %83, %88 : vector<2x256xf32>
    %cst_30 = arith.constant 0.111111112 : f32
    %90 = vector.broadcast %cst_30 : f32 to vector<2x256xf32>
    %91 = arith.mulf %87, %90 : vector<2x256xf32>
    %cst_31 = arith.constant 2.000000e-01 : f32
    %92 = vector.broadcast %cst_31 : f32 to vector<2x256xf32>
    %93 = arith.cmpf olt, %91, %92 : vector<2x256xf32>
    %94 = arith.andi %89, %93 : vector<2x256xi1>
    %95 = vector.extract_strided_slice %94 {offsets = [0, 0], sizes = [1, 256], strides = [1, 1]} : vector<2x256xi1> to vector<1x256xi1>
    %96 = vector.extract_strided_slice %94 {offsets = [1, 0], sizes = [1, 256], strides = [1, 1]} : vector<2x256xi1> to vector<1x256xi1>
    %97 = arith.andi %95, %96 : vector<1x256xi1>
    %98 = arith.extui %97 : vector<1x256xi1> to vector<1x256xi32>
    %99 = arith.sitofp %98 : vector<1x256xi32> to vector<1x256xf32>
    %100 = vector.broadcast %99 : vector<1x256xf32> to vector<4x256xf32>
    %101 = arith.mulf %56, %100 : vector<4x256xf32>
    %c0_32 = arith.constant 0 : index
    %c0_33 = arith.constant 0 : index
    %c0_34 = arith.constant 0 : index
    %102 = vector.load %arg7[%c0_32, %c0_33, %c0_34] : memref<1x4x256xf32, #tpu.memory_space<vmem>>, vector<1x4x256xf32>
    %103 = vector.shape_cast %102 : vector<1x4x256xf32> to vector<4x256xf32>
    %104 = vector.shape_cast %101 : vector<4x256xf32> to vector<1x4x256xf32>
    tpu.vector_store %arg7[%c0_32, %c0_33, %c0_34], %104 {strides = array<i32>} : memref<1x4x256xf32, #tpu.memory_space<vmem>>, vector<1x4x256xf32>,
    return
  }
  func.func @transform_0(%arg0: i32) -> (i32, i32, i32) {
    %c0_i32 = arith.constant 0 : i32
    %c0_i32_0 = arith.constant 0 : i32
    %c0_i32_1 = arith.constant 0 : i32
    return %arg0, %c0_i32, %c0_i32_0 : i32, i32, i32
  }
  func.func @transform_1(%arg0: i32) -> (i32, i32, i32) {
    %c0_i32 = arith.constant 0 : i32
    %c0_i32_0 = arith.constant 0 : i32
    %c0_i32_1 = arith.constant 0 : i32
    return %arg0, %c0_i32, %c0_i32_0 : i32, i32, i32
  }
  func.func @transform_2(%arg0: i32) -> (i32, i32) {
    %c0_i32 = arith.constant 0 : i32
    %c0_i32_0 = arith.constant 0 : i32
    %c0_i32_1 = arith.constant 0 : i32
    return %c0_i32, %c0_i32_0 : i32, i32
  }
  func.func @transform_3(%arg0: i32) -> (i32, i32) {
    %c0_i32 = arith.constant 0 : i32
    %c0_i32_0 = arith.constant 0 : i32
    %c0_i32_1 = arith.constant 0 : i32
    return %c0_i32, %c0_i32_0 : i32, i32
  }
  func.func @transform_4(%arg0: i32) -> (i32, i32) {
    %c0_i32 = arith.constant 0 : i32
    %c0_i32_0 = arith.constant 0 : i32
    %c0_i32_1 = arith.constant 0 : i32
    return %c0_i32, %c0_i32_0 : i32, i32
  }
  func.func @transform_5(%arg0: i32) -> (i32, i32) {
    %c0_i32 = arith.constant 0 : i32
    %c0_i32_0 = arith.constant 0 : i32
    %c0_i32_1 = arith.constant 0 : i32
    return %c0_i32, %c0_i32_0 : i32, i32
  }
  func.func @transform_6(%arg0: i32) -> (i32, i32, i32) {
    %c0_i32 = arith.constant 0 : i32
    %c0_i32_0 = arith.constant 0 : i32
    %c0_i32_1 = arith.constant 0 : i32
    return %arg0, %c0_i32, %c0_i32_0 : i32, i32, i32
  }
}

</mosaic_0001>

<bundles_post_ra>
// kernel: tpu_custom_call.1
= control target key start
LH: loop header
LB: loop body
LE: loop exit
PB: predicated region body
PF: predicated region fallthrough
CT: control target
= control target key end

     0   :  { %11 = vsyncpa [#allocation3], 0  ;;  %s1527_s0 = inlined_call_operand.hbm [shape: f32[2,4,256], index: 0, kind: input, shape index: {}]   ;;  %s1528_s1 = inlined_call_operand.vmem [shape: f32[2,1,256], index: 1, kind: input, shape index: {}]   ;;  %s1529_s2 = inlined_call_operand.vmem [shape: f32[32,36], index: 2, kind: input, shape index: {}]   ;;  %s1530_s3 = inlined_call_operand.vmem [shape: f32[32,1], index: 3, kind: input, shape index: {}]   ;;  %s1531_s4 = inlined_call_operand.vmem [shape: f32[4,32], index: 4, kind: input, shape index: {}]   ;;  %s1532_s5 = inlined_call_operand.vmem [shape: f32[4,1], index: 5, kind: input, shape index: {}]   ;;  %s1533_s6 = inlined_call_operand.hbm [shape: f32[2,4,256], index: 6, kind: output, shape index: {}]  }
   0x1   :  { %13 = vsyncpa [#allocation3 + $0x1], 0 }
   0x2   :  { %14 = vsyncpa [#allocation4], 0 }
   0x3   :  { %16 = vsyncpa [#allocation4 + $0x1], 0  ;;  %s1164_s21 = smov 0   ;;  %s1166_s22 = smov 0  }
   0x4   :  { %s1168_s23 = smov 0   ;;  %s1170_s24 = smov 0  }
   0x5 LB: > { %s1185_s25 = sadd.s32 4294967295, %s1117_s24   ;;  %s941_s26 = sadd.s32 4294967294, %s1117_s24   ;;  %s1117_s24 = sphi %s1170_s24, %s1566_s24   ;;  %s1113_s23 = sphi %s1168_s23, %s1565_s23   ;;  %s1109_s22 = sphi %s1166_s22, %s1564_s22   ;;  %s1105_s21 = sphi %s1164_s21, %s1563_s21  }
   0x6   : > { %s1189_s27 = sadd.s32 1, %s1117_s24   ;;  %s29_s28 = sadd.s32 1, %s1113_s23 }
   0x7   : > { %s26_s29 = ssub.s32 %s1117_s24, %s1189_s27  ;;  %p36_p0 = scmp.ne.s32.totalorder %s1113_s23, %s1109_s22 }
   0x8   : > { %p27_p1 = scmp.eq.s32.totalorder %s26_s29, 0  ;;  %p37_p2 = scmp.eq.s32.totalorder %s1117_s24, 0 }
   0x9   : > { %p42_p3 = scmp.ne.s32.totalorder %s1109_s22, %s1105_s21  ;;  %p43_p4 = scmp.eq.s32.totalorder %s1185_s25, 0 }
   0xa   : > { %s1201_s30 = scalar_select %p27_p1, %s1113_s23, %s29_s28  }
   0xb   : > { %p1203_p5 = por %p37_p2, %p36_p0  ;;  %p1207_p6 = por %p43_p4, %p42_p3 }
   0xc   : > { %p176_p7 = scmp.eq.s32.totalorder %s1185_s25, 1  ;;  %p182_p8 = scmp.eq.s32.totalorder %s941_s26, 1 }
   0xd   : > { %s1540_s8 = scalar_select %p1207_p6, 1, 0 }
   0xe   : > { %p979_p10 = scmp.lt.s32.totalorder %s1117_s24, 2  ;;  %p1214_p11 = por %p176_p7, %p36_p0 }
   0xf   : > { %p1218_p12 = por %p182_p8, %p42_p3  ;;  %s214_s11 = sand.u32 1, %s1113_s23  }
  0x10   : > { %s1541_s9 = scalar_select %p1214_p11, 1, 0 }
  0x11   : > { %s1542_s10 = scalar_select %p1218_p12, 1, 0 }
  0x12   : > { %s965_s12 = sshll.u32 %s1117_s24, 7  ;;  %s944_s13 = sshll.u32 %s214_s11, 3 }
  0x13   : > { %s1227_s16 = scalar_lea.hbm %s1527_s0, %s965_s12  ;;  %s218_s17 = scalar_lea.vmem [#allocation2], %s944_s13 }
  0x14   : > { %s226_s18 = sshll.u32 %s218_s17, 4  ;;  %p1231_p13 = pnand %p979_p10, %p1203_p5  ;;  %s1235_s18 = int_to_ptr.vmem [resolvable:$true] %s226_s18 }
  0x15   : > { %s215_s20 = scalar_lea.sflag [#allocation3], %s214_s11  ;;  %s1025_s26 = scalar_lea.hbm %s1227_s16, 128 }
  0x16   : > { %p1026_p2 = scmp.ne.s32.totalorder %s1227_s16, %s1025_s26  ;;  %p1027_p3 = pneg %p1231_p13 }
  0x17   : > { %s1030_s7 = scalar_lea.hbm %s1527_s0, 256  ;;  %p1031_p5 = scmp.lt.s32.totalorder %s1227_s16, %s1527_s0 }
  0x18   : > { %p1028_p4 = pnand %p1027_p3, %p1026_p2  ;;  %p1032_p8 = scmp.lt.s32.totalorder %s1030_s7, %s1025_s26 }
  0x1a   : > { %p1029_p7 = pneg %p1028_p4  ;;  %p1033_p10 = por %p1032_p8, %p1031_p5 }
  0x1c   : > { %p1034_p9 = pnand %p1033_p10, %p1029_p7 }
  0x1e   : > { %1037 = shalt.err (!%p1034_p9)
}
  0x1f   : > { %s1038_s11 = scalar_lea.vmem %s1235_s18, 128  ;;  %s1119_s14 = smov [#allocation2]  }
  0x20   : > { %p1039_p0 = scmp.ne.s32.totalorder %s1235_s18, %s1038_s11  ;;  %s1043_s15 = sshll.u32 %s1119_s14, 4  ;;  %s1044_s15 = int_to_ptr.vmem [resolvable:$false] %s1043_s15 }
  0x21   : > { %s1045_s17 = scalar_lea.vmem %s1044_s15, 256  ;;  %p1046_p4 = scmp.lt.s32.totalorder %s1235_s18, %s1044_s15 }
  0x22   : > { %p1041_p1 = pnand %p1039_p0, %p1027_p3  ;;  %p1047_p12 = scmp.lt.s32.totalorder %s1045_s17, %s1038_s11 }
  0x24   : > { %p1042_p2 = pneg %p1041_p1  ;;  %p1048_p11 = por %p1047_p12, %p1046_p4 }
  0x26   : > { %p1049_p6 = pnand %p1048_p11, %p1042_p2 }
  0x28   : > { %1052 = shalt.err (!%p1049_p6)
}
  0x29   : > { %974 = dma.hbm_to_vmem [thread:$0]  (!%p1231_p13), %s1227_s16, 128, %s1235_s18, %s215_s20  }
  0x2a   : > { %p1544_p9 = scmp.lt.s32.totalorder %s1117_s24, 3  ;;  %p1545_p7 = scmp.ge.s32.totalorder %s1117_s24, 1 }
  0x2c   : > { %p239_p0 = pnand %p1545_p7, %p1544_p9 }
  0x2d   : > { %s1262_s26 = sand.u32 (!%p239_p0), 1, %s1109_s22   ;;  %p1546_p6 = scmp.ne.s32.totalorder (!%p239_p0), %s1540_s8, 0 }
  0x2e   : > { %242 = sbr.rel (%p239_p0) target bundleno = 1030 (0x406), region = 44  ;;  %s1536_s28 = sshll.u32 (!%p239_p0), %s1262_s26, 3 }
  0x2f   : > { %s245_s29 = scalar_lea.sflag (!%p239_p0), [#allocation3], %s1262_s26  ;;  %s248_s19 = scalar_lea.vmem (!%p239_p0), [#allocation2], %s1536_s28 }
  0x33   : > { %1096 = dma.done.wait (%p1546_p6), %s245_s29, 128  }
  0x34   : > { %1098 = vsyncadd (%p1546_p6), %s245_s29, 4294967168  ;;  %v1272_v0 = vld [vmem:[%s248_s19] sm:$0xff]  ;;  %s1120_s16 = smov 15   ;;  %s1121_s18 = smov 127   ;;  %v285_v2 = vlaneseq  ;;  %vm373_vm8 = vcmask 1043456   ;;  %v1125_v31 = vmov 0.0  }
  0x35   : > { %358 = vrot.lane.b32.xlu1 %v1272_v0, %s1120_s16  ;;  %351 = vrot.lane.b32.xlu0 %v1272_v0, %s1121_s18  ;;  %v329_v1 = vcombine.high %v1272_v0, %v1272_v0  ;;  %s1122_s20 = smov 1   ;;  %s1123_s8 = smov 113   ;;  %v371_v24 = vcombine.low %v1272_v0, %v1272_v0  ;;  %v323_v47 = vld [vmem:[%s1530_s3 + $0x18] sm:$0xff]  ;;  %v322_v48 = vld [vmem:[%s1530_s3 + $0x10] sm:$0xff]  ;;  %v1127_v49 = vmov 0   ;;  %vm438_vm11 = vcmask 293888  }
  0x36   : > { %v1289_v3 = vand.u32 127, %v285_v2  ;;  %s1124_s7 = smov 112   ;;  %521 = vmatprep.mubr.f32.mxu0 %v1125_v31  ;;  %643 = vmatprep.mubr.f32.mxu1 %v1125_v31  ;;  %s1126_s12 = smov 16   ;;  %v320_v50 = vld [vmem:[%s1530_s3] sm:$0xff]  ;;  %v321_v51 = vld [vmem:[%s1530_s3 + $0x8] sm:$0xff] }
  0x37   : > { %1021 = vset.pattern.permute.xlu0 %v1127_v49  ;;  %1022 = vset.pattern.permute.xlu1 %v1127_v49  ;;  %v325_v52 = vld [vmem:[%s1532_s5] sm:$0xf]  ;;  %p281_p11 = scmp.lt.s32.totalorder %s1185_s25, 1  ;;  %s845_s28 = scalar_lea.sflag [#allocation4], %s1262_s26 }
  0x38   : > { %v287_v4 = vadd.s32 128, %v1289_v3  ;;  %v292_v8 = vand.u32 15, %v1289_v3  ;;  %vm362_vm0 = vcmp.lt.s32.totalorder %v1289_v3, 15  ;;  %vm355_vm1 = vcmp.lt.s32.totalorder %v1289_v3, 127  ;;  %p1560_p13 = scmp.ne.s32.totalorder %s1541_s9, 0 }
  0x39   : > { %331 = vrot.lane.b32.xlu0 %v1272_v0, %s1122_s20  ;;  %360 = vrot.lane.b32.xlu1 %v329_v1, %s1120_s16  ;;  %vm335_vm4 = vcmp.lt.s32.totalorder %v1289_v3, 1  ;;  %vm342_vm5 = vcmp.lt.s32.totalorder %v1289_v3, 113  ;;  %vm1538_vm9 = vcmp.lt.s32.totalorder %v1289_v3, 112  ;;  %vm1537_vm10 = vcmp.lt.s32.totalorder %v1289_v3, 16  ;;  %s282_s15 = scalar_select %p281_p11, %s1185_s25, 1 }
  0x3a   : > { %v299_v7 = vand.u32 15, %v287_v4  ;;  %vm1299_vm3 = vcmp.lt.s32.totalorder %v292_v8, 15  ;;  %vm1323_vm7 = vcmp.ge.s32.totalorder %v292_v8, 1 }
  0x3b   : > { %s950_s17 = sshll.u32 %s282_s15, 1  ;;  %s1128_s15 = smov [#allocation5]  }
  0x3c   : > { %vm1295_vm2 = vcmp.lt.s32.totalorder %v299_v7, 15  ;;  %vm1319_vm6 = vcmp.ge.s32.totalorder %v299_v7, 1  ;;  %s284_s13 = scalar_lea.vmem %s1528_s1, %s950_s17 }
  0x3d   : > { %333 = vrot.lane.b32.xlu1 %v329_v1, %s1122_s20  ;;  %353 = vrot.lane.b32.xlu0 %v329_v1, %s1121_s18 }
  0x41   : > { %340 = vrot.lane.b32.xlu1 %v329_v1, %s1123_s8  ;;  %338 = vrot.lane.b32.xlu0 %v1272_v0, %s1123_s8 }
  0xa7   : > { %v359_v5 = vpop.permute.xlu1 %358  ;;  %v352_v6 = vpop.permute.xlu0 %351 }
  0xab   : > { %v332_v9 = vpop.permute.xlu0 %331  ;;  %v361_v10 = vpop.permute.xlu1 %360 }
  0xac   : > { %v363_v15 = vsel %vm362_vm0, %v359_v5, %v361_v10  ;;  %v364_v16 = vsel %vm362_vm0, %v361_v10, %v359_v5  ;;  %v316_v10 = vld [vmem:[%s1529_s2] sm:$0xff] }
  0xaf   : > { %v334_v13 = vpop.permute.xlu1 %333  ;;  %v354_v14 = vpop.permute.xlu0 %353 }
  0xb0   : > { %v356_v17 = vsel %vm355_vm1, %v352_v6, %v354_v14  ;;  %v357_v18 = vsel %vm355_vm1, %v354_v14, %v352_v6  ;;  %v336_v27 = vsel %vm335_vm4, %v332_v9, %v334_v13  ;;  %v337_v28 = vsel %vm335_vm4, %v334_v13, %v332_v9  ;;  %v317_v13 = vld [vmem:[%s1529_s2 + $0x8] sm:$0xff]  ;;  %v318_v14 = vld [vmem:[%s1529_s2 + $0x10] sm:$0xff] }
  0xb1   : > { %v370_v19 = vsel %vm1295_vm2, %v357_v18, %v363_v15  ;;  %v369_v20 = vsel %vm1299_vm3, %v356_v17, %v364_v16  ;;  %v319_v15 = vld [vmem:[%s1529_s2 + $0x18] sm:$0xff] }
  0xb2   : > { %395 = vrot.lane.b32.xlu1 %v370_v19, %s1124_s7  ;;  %391 = vrot.lane.b32.xlu0 %v369_v20, %s1124_s7  ;;  %v668_v21 = vcombine.low %v369_v20, %v370_v19  ;;  %v410_v41 = vrot.slane %v370_v19, 4  ;;  %v408_v42 = vrot.slane %v369_v20, 4 }
  0xb3   : > { %v341_v25 = vpop.permute.xlu1 %340  ;;  %v339_v26 = vpop.permute.xlu0 %338 }
  0xb4   : > { %v343_v29 = vsel %vm342_vm5, %v339_v26, %v341_v25  ;;  %v344_v30 = vsel %vm342_vm5, %v341_v25, %v339_v26  ;;  %v670_v34 = vmax.f32 %v1272_v0, %v668_v21  ;;  %v676_v38 = vadd.f32 %v668_v21, %v1272_v0 }
  0xb5   : > { %v350_v32 = vsel %vm1319_vm6, %v336_v27, %v344_v30  ;;  %v349_v33 = vsel %vm1323_vm7, %v337_v28, %v343_v29 }
  0xb6   : > { %v375_v35 = vsel %vm373_vm8, %v350_v32, %v1272_v0  ;;  %v374_v36 = vsel %vm373_vm8, %v349_v33, %v371_v24  ;;  %v673_v37 = vcombine.low %v349_v33, %v350_v32 }
  0xb7   : > { %393 = vrot.lane.b32.xlu1 %v375_v35, %s1124_s7  ;;  %v407_v39 = vrot.slane %v375_v35, 4  ;;  %389 = vrot.lane.b32.xlu0 %v374_v36, %s1124_s7  ;;  %v406_v40 = vrot.slane %v374_v36, 4 }
  0xb8   : > { %v1350_v43 = vmax.f32 %v670_v34, %v673_v37  ;;  %v1352_v44 = vadd.f32 %v676_v38, %v673_v37 }
  0xb9   : > { %v411_v45 = vsel %vm373_vm8, %v407_v39, %v410_v41  ;;  %v409_v46 = vsel %vm373_vm8, %v406_v40, %v408_v42 }
  0xbb   : > { %382 = vrot.lane.b32.xlu1 %v370_v19, %s1126_s12  ;;  %378 = vrot.lane.b32.xlu0 %v369_v20, %s1126_s12 }
  0xbf   : > { %380 = vrot.lane.b32.xlu1 %v375_v35, %s1126_s12  ;;  %376 = vrot.lane.b32.xlu0 %v374_v36, %s1126_s12 }
  0xc3   : > { %435 = vperm.xlu0 %1021, %v323_v47   ;;  %430 = vperm.xlu1 %1022, %v322_v48  }
  0xc7   : > { %420 = vperm.xlu0 %1021, %v320_v50   ;;  %425 = vperm.xlu1 %1022, %v321_v51  }
  0xcb   : > { %572 = vperm.xlu1 %1022, %v325_v52  }
 0x124   : > { %v396_v53 = vpop.permute.xlu1 %395  ;;  %v392_v54 = vpop.permute.xlu0 %391 }
 0x125   : > { %v401_v55 = vsel %vm1538_vm9, %v396_v53, %v392_v54  ;;  %v399_v56 = vsel %vm1538_vm9, %v392_v54, %v396_v53 }
 0x126   : > { %951 = vmatprep.subr.msk.mxu0 %vm373_vm8, %v401_v55 }
 0x127   : > { %952 = vmatpush1.msk.msra.mxu0 %vm373_vm8, %v399_v56 }
 0x129   : > { %v394_v57 = vpop.permute.xlu1 %393  ;;  %v390_v58 = vpop.permute.xlu0 %389 }
 0x12a   : > { %v400_v59 = vsel %vm1538_vm9, %v394_v57, %v390_v58  ;;  %v398_v60 = vsel %vm1538_vm9, %v390_v58, %v394_v57  ;;  %v324_v57 = vld [vmem:[%s1531_s4] sm:$0xf] }
 0x12b   : > { %481 = vmatprep.subr.mxu0 %v400_v59  ;;  %v652_v59 = vshrl.u32 %v285_v2, 7 }
 0x12c   : > { %482 = vmatpush1.msra.mxu0 %v398_v60 }
 0x12d   : > { %v383_v61 = vpop.permute.xlu1 %382  ;;  %483 = vmatprep.subr.mxu0 %v411_v45  ;;  %v379_v62 = vpop.permute.xlu0 %378  ;;  %v1423_v60 = vsub.s32 0, %v652_v59  ;;  %v681_v2 = vsub.s32 3, %v652_v59 }
 0x12e   : > { %v386_v63 = vsel %vm1537_vm10, %v379_v62, %v383_v61  ;;  %v388_v1 = vsel %vm1537_vm10, %v383_v61, %v379_v62  ;;  %484 = vmatpush1.msra.mxu0 %v409_v46  ;;  %v657_v61 = vsub.s32 1, %v652_v59  ;;  %v327_v62 = vld [vmem:[%s284_s13] sm:$0x3] }
 0x12f   : > { %v417_v4 = vsel %vm373_vm8, %v386_v63, %v407_v39  ;;  %v416_v5 = vsel %vm373_vm8, %v388_v1, %v406_v40  ;;  %v757_v23 = vrot.slane %v1352_v44, %v681_v2 }
 0x130   : > { %485 = vmatprep.subr.mxu0 %v417_v4 }
 0x131   : > { %v381_v6 = vpop.permute.xlu1 %380  ;;  %486 = vmatpush1.msra.mxu0 %v416_v5  ;;  %v377_v7 = vpop.permute.xlu0 %376  ;;  %v654_v5 = vrot.slane %v327_v62, %v1423_v60 }
 0x132   : > { %v385_v8 = vsel %vm1537_vm10, %v377_v7, %v381_v6  ;;  %v387_v9 = vsel %vm1537_vm10, %v381_v6, %v377_v7  ;;  %v658_v6 = vrot.slane %v327_v62, %v657_v61 }
 0x133   : > { %487 = vmatprep.subr.mxu0 %v385_v8 }
 0x134   : > { %488 = vmatpush1.msra.mxu0 %v387_v9 }
 0x135   : > { %953 = vmatmul.mubr.msk.f32.vlgmr.msra.gmra.mxu0 %vm438_vm11, %v316_v10 }
 0x136   : > { %527 = vmatprep.mubr.f32.mxu0 %v1125_v31 }
 0x139   : > { %954 = vmatmul.mubr.msk.f32.gmra.mxu0 %vm438_vm11, %v317_v13 }
 0x13a   : > { %533 = vmatprep.mubr.f32.mxu0 %v1125_v31 }
 0x13d   : > { %955 = vmatmul.mubr.msk.f32.gmra.mxu0 %vm438_vm11, %v318_v14  ;;  %v685_v14 = vsub.s32 7, %v652_v59 }
 0x13e   : > { %539 = vmatprep.mubr.f32.mxu0 %v1125_v31  ;;  %v431_v20 = vpop.permute.xlu1 %430  ;;  %v436_v24 = vpop.permute.xlu0 %435 }
 0x13f   : > { %v761_v22 = vrot.slane %v1352_v44, %v685_v14 }
 0x141   : > { %956 = vmatmul.mubr.msk.f32.gmra.mxu0 %vm438_vm11, %v319_v15 }
 0x142   : > { %v426_v27 = vpop.permute.xlu1 %425  ;;  %v421_v33 = vpop.permute.xlu0 %420 }
 0x146   : > { %v573_v63 = vpop.permute.xlu1 %572 }
 0x1f5   : > { %v523_v16 = vpop.f32.mrf.mxu0 }
 0x1f6   : > { %v524_v41 = vadd.f32 %v523_v16, %v421_v33 }
 0x1f7   : > { %v525_v17 = vpop.f32.mrf.mxu0 }
 0x1f8   : > { %v526_v36 = vadd.f32 %v525_v17, %v421_v33  ;;  %v554_v52 = vmul.f32 0.01, %v524_v41  ;;  %vm546_vm9 = vcmp.gt.f32.partialorder %v524_v41, 0.0 }
 0x1f9   : > { %v529_v18 = vpop.f32.mrf.mxu0 }
 0x1fa   : > { %v530_v37 = vadd.f32 %v529_v18, %v426_v27  ;;  %v555_v50 = vmul.f32 0.01, %v526_v36  ;;  %vm547_vm10 = vcmp.gt.f32.partialorder %v526_v36, 0.0  ;;  %v562_v58 = vsel %vm546_vm9, %v524_v41, %v554_v52 }
 0x1fb   : > { %v531_v19 = vpop.f32.mrf.mxu0 }
 0x1fc   : > { %v532_v34 = vadd.f32 %v531_v19, %v426_v27  ;;  %v556_v47 = vmul.f32 0.01, %v530_v37  ;;  %vm548_vm11 = vcmp.gt.f32.partialorder %v530_v37, 0.0  ;;  %v563_v56 = vsel %vm547_vm10, %v526_v36, %v555_v50 }
 0x1fd   : > { %v535_v21 = vpop.f32.mrf.mxu0  ;;  %v739_v50 = vrot.slane %v1350_v43, %v685_v14 }
 0x1fe   : > { %v536_v30 = vadd.f32 %v535_v21, %v431_v20  ;;  %v557_v45 = vmul.f32 0.01, %v532_v34  ;;  %vm549_vm8 = vcmp.gt.f32.partialorder %v532_v34, 0.0  ;;  %v564_v55 = vsel %vm548_vm11, %v530_v37, %v556_v47 }
 0x1ff   : > { %v537_v25 = vpop.f32.mrf.mxu0 }
 0x200   : > { %v538_v28 = vadd.f32 %v537_v25, %v431_v20  ;;  %v558_v42 = vmul.f32 0.01, %v536_v30  ;;  %vm550_vm15 = vcmp.gt.f32.partialorder %v536_v30, 0.0  ;;  %v565_v54 = vsel %vm549_vm8, %v532_v34, %v557_v45 }
 0x201   : > { %v541_v26 = vpop.f32.mrf.mxu0 }
 0x202   : > { %v542_v29 = vadd.f32 %v541_v26, %v436_v24  ;;  %v559_v39 = vmul.f32 0.01, %v538_v28  ;;  %vm551_vm14 = vcmp.gt.f32.partialorder %v538_v28, 0.0  ;;  %v566_v53 = vsel %vm550_vm15, %v536_v30, %v558_v42 }
 0x203   : > { %v543_v32 = vpop.f32.mrf.mxu0 }
 0x204   : > { %v544_v35 = vadd.f32 %v543_v32, %v436_v24  ;;  %v560_v38 = vmul.f32 0.01, %v542_v29  ;;  %vm552_vm13 = vcmp.gt.f32.partialorder %v542_v29, 0.0  ;;  %v567_v51 = vsel %vm551_vm14, %v538_v28, %v559_v39 }
 0x206   : > { %vm553_vm12 = vcmp.gt.f32.partialorder %v544_v35, 0.0  ;;  %v561_v40 = vmul.f32 0.01, %v544_v35  ;;  %v568_v48 = vsel %vm552_vm13, %v542_v29, %v560_v38 }
 0x208   : > { %v569_v46 = vsel %vm553_vm12, %v544_v35, %v561_v40  ;;  %vm575_vm12 = vcmask 261120  }
 0x209   : > { %603 = vmatprep.subr.mxu1 %v569_v46 }
 0x20a   : > { %604 = vmatpush1.msra.mxu1 %v568_v48  ;;  %v735_v48 = vrot.slane %v1350_v43, %v681_v2 }
 0x20b   : > { %605 = vmatprep.subr.mxu1 %v567_v51 }
 0x20c   : > { %606 = vmatpush1.msra.mxu1 %v566_v53 }
 0x20d   : > { %607 = vmatprep.subr.mxu1 %v565_v54 }
 0x20e   : > { %608 = vmatpush1.msra.mxu1 %v564_v55 }
 0x20f   : > { %609 = vmatprep.subr.mxu1 %v563_v56 }
 0x210   : > { %610 = vmatpush1.msra.mxu1 %v562_v58 }
 0x211   : > { %957 = vmatmul.mubr.msk.f32.vlgmr.msra.gmra.mxu1 %vm575_vm12, %v324_v57 }
 0x2d1   : > { %v645_v1 = vpop.f32.mrf.mxu1 }
 0x2d2   : > { %v646_v4 = vadd.f32 %v645_v1, %v573_v63 }
 0x2d3   : > { %v647_v7 = vpop.f32.mrf.mxu1 }
 0x2d4   : > { %v648_v8 = vadd.f32 %v647_v7, %v573_v63  ;;  %v661_v9 = vmul.f32 %v654_v5, %v646_v4 }
 0x2d6   : > { %v662_v10 = vmul.f32 %v658_v6, %v648_v8 }
 0x2d8   : > { %v665_v13 = vcombine.low %v661_v9, %v662_v10 }
 0x2da   : > { %v1427_v15 = vadd.f32 %v665_v13, %v1272_v0 }
 0x2dc   : > { %v686_v16 = vrot.slane %v1427_v15, %v685_v14  ;;  %v682_v17 = vrot.slane %v1427_v15, %v681_v2 }
 0x2de   : > { %691 = vrot.lane.b32.xlu1 %v686_v16, %s1121_s18  ;;  %689 = vrot.lane.b32.xlu0 %v682_v17, %s1121_s18  ;;  %s1559_s18 = sshll.u32 %s1262_s26, 3 }
 0x2e2   : > { %697 = vrot.lane.b32.xlu1 %v686_v16, %s1120_s16  ;;  %695 = vrot.lane.b32.xlu0 %v682_v17, %s1120_s16  ;;  %s966_s16 = sshll.u32 %s1185_s25, 7  ;;  %s1057_s25 = sshll.u32 %s1128_s15, 4  ;;  %s1058_s25 = int_to_ptr.vmem [resolvable:$false] %s1057_s25 }
 0x2e3   : > { %s857_s11 = scalar_lea.hbm %s1533_s6, %s966_s16  ;;  %s1059_s17 = scalar_lea.vmem %s1058_s25, 256 }
 0x2e6   : > { %705 = vrot.lane.b32.xlu1 %v686_v16, %s1122_s20  ;;  %703 = vrot.lane.b32.xlu0 %v682_v17, %s1122_s20  ;;  %s280_s20 = scalar_lea.vmem [#allocation5], %s1559_s18 }
 0x2ea   : > { %711 = vrot.lane.b32.xlu1 %v686_v16, %s1123_s8  ;;  %709 = vrot.lane.b32.xlu0 %v682_v17, %s1123_s8  ;;  %s859_s8 = sshll.u32 %s280_s20, 4  ;;  %s860_s8 = int_to_ptr.vmem [resolvable:$true] %s859_s8 }
 0x2eb   : > { %s1053_s14 = scalar_lea.vmem %s860_s8, 128  ;;  %p1060_p5 = scmp.lt.s32.totalorder %s860_s8, %s1058_s25 }
 0x2ec   : > { %p1054_p12 = scmp.ne.s32.totalorder %s860_s8, %s1053_s14  ;;  %p1061_p8 = scmp.lt.s32.totalorder %s1059_s17, %s1053_s14 }
 0x2ee   : > { %p1055_p1 = pnand %p1054_p12, %p1560_p13  ;;  %p1062_p10 = por %p1061_p8, %p1060_p5 }
 0x2f0   : > { %p1056_p3 = pneg %p1055_p1 }
 0x2f2   : > { %p1063_p2 = pnand %p1062_p10, %p1056_p3 }
 0x350   : > { %v692_v0 = vpop.permute.xlu1 %691  ;;  %v690_v18 = vpop.permute.xlu0 %689 }
 0x351   : > { %v693_v21 = vsel %vm355_vm1, %v690_v18, %v692_v0  ;;  %v694_v24 = vsel %vm355_vm1, %v692_v0, %v690_v18  ;;  %vm778_vm1 = vcmask 1041408  }
 0x354   : > { %v698_v19 = vpop.permute.xlu1 %697  ;;  %v696_v20 = vpop.permute.xlu0 %695 }
 0x355   : > { %v699_v25 = vsel %vm362_vm0, %v696_v20, %v698_v19  ;;  %v700_v26 = vsel %vm362_vm0, %v698_v19, %v696_v20  ;;  %vm775_vm0 = vcmask 1040384  }
 0x356   : > { %v701_v27 = vsel %vm1299_vm3, %v693_v21, %v700_v26  ;;  %v702_v28 = vsel %vm1295_vm2, %v694_v24, %v699_v25  ;;  %vm781_vm2 = vcmask 1042432   ;;  %vm1555_vm3 = vcmp.lt.s32.totalorder %v1289_v3, 112 }
 0x357   : > { %v719_v29 = vcombine.low %v701_v27, %v702_v28 }
 0x358   : > { %v706_v30 = vpop.permute.xlu1 %705  ;;  %v704_v32 = vpop.permute.xlu0 %703 }
 0x359   : > { %v720_v33 = vrot.slane %v719_v29, 5  ;;  %v707_v36 = vsel %vm335_vm4, %v704_v32, %v706_v30  ;;  %v708_v37 = vsel %vm335_vm4, %v706_v30, %v704_v32  ;;  %vm1556_vm4 = vmmov %vm1555_vm3 }
 0x35b   : > { %v722_v41 = vmax.f32 %v1427_v15, %v720_v33  ;;  %v729_v42 = vadd.f32 %v720_v33, %v1427_v15 }
 0x35c   : > { %v712_v34 = vpop.permute.xlu1 %711  ;;  %v710_v35 = vpop.permute.xlu0 %709 }
 0x35d   : > { %v713_v38 = vsel %vm342_vm5, %v710_v35, %v712_v34  ;;  %v714_v12 = vsel %vm342_vm5, %v712_v34, %v710_v35  ;;  %vm1557_vm5 = vcmp.lt.s32.totalorder %v1289_v3, 16 }
 0x35e   : > { %v715_v11 = vsel %vm1323_vm7, %v708_v37, %v713_v38  ;;  %v716_v39 = vsel %vm1319_vm6, %v707_v36, %v714_v12  ;;  %vm1558_vm6 = vmmov %vm1557_vm5 }
 0x35f   : > { %v725_v40 = vcombine.low %v715_v11, %v716_v39 }
 0x361   : > { %v726_v45 = vrot.slane %v725_v40, 5 }
 0x363   : > { %v728_v46 = vmax.f32 %v722_v41, %v726_v45  ;;  %v730_v47 = vadd.f32 %v729_v42, %v726_v45 }
 0x365   : > { %v746_v51 = vrot.slane %v728_v46, %v681_v2  ;;  %v750_v52 = vrot.slane %v728_v46, %v685_v14  ;;  %v772_v53 = vrot.slane %v730_v47, %v685_v14  ;;  %v768_v55 = vrot.slane %v730_v47, %v681_v2 }
 0x367   : > { %v777_v54 = vsel %vm775_vm0, %v739_v50, %v750_v52  ;;  %v776_v56 = vsel %vm775_vm0, %v735_v48, %v746_v51 }
 0x368   : > { %v780_v57 = vsel %vm778_vm1, %v777_v54, %v761_v22  ;;  %v779_v58 = vsel %vm778_vm1, %v776_v56, %v757_v23 }
 0x369   : > { %v783_v59 = vsel %vm781_vm2, %v780_v57, %v772_v53  ;;  %v782_v61 = vsel %vm781_vm2, %v779_v58, %v768_v55 }
 0x36a   : > { %786 = vrot.lane.b32.xlu1 %v783_v59, %s1124_s7  ;;  %784 = vrot.lane.b32.xlu0 %v782_v61, %s1124_s7 }
 0x36e   : > { %792 = vrot.lane.b32.xlu1 %v783_v59, %s1126_s12  ;;  %790 = vrot.lane.b32.xlu0 %v782_v61, %s1126_s12 }
 0x3dc   : > { %v787_v43 = vpop.permute.xlu1 %786  ;;  %v785_v62 = vpop.permute.xlu0 %784 }
 0x3dd   : > { %v788_v44 = vsel %vm1555_vm3, %v785_v62, %v787_v43  ;;  %v789_v63 = vsel %vm1556_vm4, %v787_v43, %v785_v62 }
 0x3de   : > { %v800_v1 = vadd.f32 %v788_v44, %v782_v61  ;;  %v801_v4 = vadd.f32 %v789_v63, %v783_v59  ;;  %v796_v13 = vmax.f32 %v782_v61, %v788_v44  ;;  %v797_v14 = vmax.f32 %v783_v59, %v789_v63 }
 0x3e0   : > { %v793_v5 = vpop.permute.xlu1 %792  ;;  %v791_v6 = vpop.permute.xlu0 %790 }
 0x3e1   : > { %v794_v7 = vsel %vm1557_vm5, %v791_v6, %v793_v5  ;;  %v795_v8 = vsel %vm1558_vm6, %v793_v5, %v791_v6 }
 0x3e2   : > { %v802_v9 = vadd.f32 %v800_v1, %v795_v8  ;;  %v803_v10 = vadd.f32 %v801_v4, %v794_v7  ;;  %v798_v17 = vmax.f32 %v796_v13, %v795_v8  ;;  %v799_v0 = vmax.f32 %v797_v14, %v794_v7 }
 0x3e4   : > { %v806_v2 = vmul.f32 0.11111111, %v802_v9  ;;  %v807_v16 = vmul.f32 0.11111111, %v803_v10  ;;  %vm804_vm10 = vcmp.gt.f32.partialorder %v798_v17, 0.1 }
 0x3e5   : > { %vm805_vm14 = vcmp.gt.f32.partialorder %v799_v0, 0.1 }
 0x3e6   : > { %vm808_vm7 = vcmp.lt.f32.partialorder %v806_v2, 0.2  ;;  %vm809_vm9 = vcmp.lt.f32.partialorder %v807_v16, 0.2 }
 0x3e7   : > { %v810_v18 = vsel %vm808_vm7, 1, %v1127_v49  ;;  %v811_v19 = vsel %vm809_vm9, 1, %v1127_v49 }
 0x3e8   : > { %v812_v20 = vrot.slane %v810_v18, 2  ;;  %v813_v21 = vrot.slane %v811_v19, 2 }
 0x3ea   : > { %vm814_vm13 = vcmp.ne.s32.totalorder %v812_v20, 0  ;;  %vm815_vm15 = vcmp.ne.s32.totalorder %v813_v21, 0 }
 0x3eb   : > { %vm816_vm8 = vmand %vm804_vm10, %vm814_vm13 }
 0x3ec   : > { %vm817_vm11 = vmand %vm805_vm14, %vm815_vm15  ;;  %v818_v3 = vsel %vm816_vm8, 1, %v1127_v49 }
 0x3ed   : > { %v819_v24 = vsel %vm817_vm11, 1, %v1127_v49  ;;  %v820_v25 = vrot.slane %v818_v3, 1 }
 0x3ee   : > { %v821_v26 = vrot.slane %v819_v24, 1 }
 0x3ef   : > { %vm822_vm12 = vcmp.ne.s32.totalorder %v820_v25, 0 }
 0x3f0   : > { %vm823_vm0 = vcmp.ne.s32.totalorder %v821_v26, 0  ;;  %vm824_vm1 = vmand %vm816_vm8, %vm822_vm12 }
 0x3f1   : > { %vm825_vm2 = vmand %vm817_vm11, %vm823_vm0  ;;  %v958_v27 = vsel %vm824_vm1, 1.0, %v1125_v31 }
 0x3f2   : > { %v959_v28 = vsel %vm825_vm2, 1.0, %v1125_v31  ;;  %v833_v29 = vrot.slane %v958_v27, %v1423_v60 }
 0x3f3   : > { %v837_v30 = vrot.slane %v959_v28, %v1423_v60 }
 0x3f5   : > { %v840_v49 = vcombine.low %v833_v29, %v837_v30 }
 0x3f7   : > { %v842_v32 = vmul.f32 %v840_v49, %v1427_v15 }
 0x3f9   : > { %843 = vst [vmem:[%s280_s20] sm:$0xff] %v842_v32 }
 0x3fa   : > { %1066 = shalt.err (!%p1063_p2)
}
 0x3fb   : > { %s1067_s29 = scalar_lea.hbm %s857_s11, 128  ;;  %s1071_s13 = scalar_lea.hbm %s1533_s6, 256 }
 0x3fc   : > { %p1068_p4 = scmp.ne.s32.totalorder %s857_s11, %s1067_s29  ;;  %p1072_p0 = scmp.lt.s32.totalorder %s857_s11, %s1533_s6 }
 0x3fd   : > { %p1073_p6 = scmp.lt.s32.totalorder %s1071_s13, %s1067_s29 }
 0x3fe   : > { %p1069_p9 = pnand %p1068_p4, %p1560_p13 }
 0x3ff   : > { %p1074_p11 = por %p1073_p6, %p1072_p0 }
 0x400   : > { %p1070_p7 = pneg %p1069_p9 }
 0x402   : > { %p1075_p12 = pnand %p1074_p11, %p1070_p7 }
 0x404   : > { %1078 = shalt.err (!%p1075_p12)
}
 0x405   : > { %969 = dma.vmem_to_hbm [thread:$0]  (%p1560_p13), %s860_s8, 128, %s857_s11, %s845_s28  }
 0x406 PF: > { %s871_s20 = sand.u32 1, %s1105_s21   ;;  %p1561_p1 = scmp.ne.s32.totalorder %s1542_s10, 0 }
 0x407   : > { %p1562_p3 = scmp.ge.s32.totalorder %s1117_s24, 2  ;;  %s872_s7 = scalar_lea.sflag [#allocation4], %s871_s20 }
 0x409   : > { %p976_p5 = pnand %p1562_p3, %p1561_p1 }
 0x40b   : > { %p977_p8 = pneg %p976_p5 }
 0x40d   : > { %1100 = dma.done.wait (%p977_p8), %s872_s7, 128  }
 0x40e   : > { %1102 = vsyncadd (%p977_p8), %s872_s7, 4294967168  ;;  %p19_p10 = scmp.ge.s32.totalorder %s1189_s27, 4   ;;  %s1563_s21 = smov %s1109_s22 }
 0x40f   : > { %s1564_s22 = smov %s1113_s23  ;;  %s1565_s23 = smov %s1201_s30 }
 0x410   : > { %s1566_s24 = smov %s1189_s27  ;;  %21 = sbr.rel (!%p19_p10) target bundleno = 5 (0x5), region = 92 }
 0x415   :  { %877 = vsyncpa [#allocation3], 1 }
 0x416   :  { %879 = vsyncpa [#allocation3 + $0x1], 1 }
 0x417   :  { %880 = vsyncpa [#allocation4], 1 }
 0x418   :  { %882 = vsyncpa [#allocation4 + $0x1], 1 }

</bundles_post_ra>
